<compile_context>
chip_gen: v5e
topology: v5e:2x2
jax: 0.10.0
libtpu: 0.0.40
codegen_flags: <defaults>
</compile_context>

<pallas_src>
import functools

import jax
import jax.numpy as jnp
from jax import lax
from jax.experimental import pallas as pl
from jax.experimental.pallas import tpu as pltpu


def _vq_kernel(zt_ref, eaug_ref, et_ref, zqt_ref, idx_ref, rloss_ref, zaug_ref):
    """One (batch, row-tile) block of vector quantization, transposed layout.

    zt_ref   : (D, TN)      f32  z^T columns (lane axis = spatial rows)
    eaug_ref : (n_e, D+1)   f32  [-2*e | ||e||^2]   (static)
    et_ref   : (D, n_e)     f32  codebook transposed (static, for the gather)
    zqt_ref  : (D, TN)      out  quantized rows (straight-through fwd value)
    idx_ref  : (1, TN)      out  argmin codebook indices (int32)
    rloss_ref: (1, TN)      out  per-row sum((z_q - z)^2)
    zaug_ref : (D+1, TN)    VMEM scratch: [z^T ; 1]
    """
    D, TN = zt_ref.shape
    n_e = eaug_ref.shape[0]

    zt = zt_ref[...]                                              # (D, TN) f32

    # Augmented z^T block so the -2 scale and +||e||^2 bias ride the MXU
    # contraction (K: D -> D+1); no VPU pass over the (n_e, TN) matrix needed.
    zaug_ref[0:D, :] = zt
    zaug_ref[D:D + 1, :] = jnp.ones((1, TN), dtype=jnp.float32)

    # d^T[k, t] = ||e_k||^2 - 2 <e_k, z_t>   (row-constant ||z_t||^2 dropped:
    # it cannot change the argmin and the loss uses z_q - z directly).
    d = jnp.dot(eaug_ref[...], zaug_ref[...],
                preferred_element_type=jnp.float32)               # (n_e, TN)

    # argmin over the codebook (sublane) axis, first-occurrence tie-break.
    min_val = jnp.min(d, axis=0, keepdims=True)                   # (1, TN)
    row = lax.broadcasted_iota(jnp.int32, d.shape, 0)             # (n_e, TN)
    idx = jnp.min(jnp.where(d == min_val, row, jnp.int32(n_e)),
                  axis=0, keepdims=True)                          # (1, TN)

    # Codebook gather as a lane-dense MXU matmul against the one-hot mask:
    # (D, n_e) @ (n_e, TN) -> (D, TN), feeding the lane-dense z_q^T store.
    one_hot_t = (row == idx).astype(jnp.float32)                  # (n_e, TN)
    zq_t = jnp.dot(et_ref[...], one_hot_t,
                   preferred_element_type=jnp.float32)            # (D, TN)

    diff = zq_t - zt
    # straight-through estimator (forward value): z + (z_q - z)
    zqt_ref[...] = (zt + diff).astype(zqt_ref.dtype)
    idx_ref[...] = idx
    rloss_ref[...] = jnp.sum(diff * diff, axis=0, keepdims=True)


def _choose_row_tile(hw, batch, n_e, max_tile=2048, temp_budget_bytes=16 << 20):
    """Lane-aligned row tile TN and per-batch tile count.

    - as large as practical (amortizes the ~600-cycle per-grid-step overhead),
    - capped so the two (n_e, TN) f32 temporaries (d, one-hot) fit the budget
      (v7x has 64 MiB VMEM, half of v5e/v6e),
    - capped at the padded per-batch row count,
    - shrunk if needed so the grid has >= 2 steps (v7x: 2 TensorCores).
    """
    lane = 128
    cap = max(lane, (temp_budget_bytes // (2 * 4 * max(n_e, 1))) // lane * lane)
    hw_pad128 = ((hw + lane - 1) // lane) * lane
    tn = min(max_tile, cap, hw_pad128)
    tn = max(lane, (tn // lane) * lane)
    num_tiles = -(-hw // tn)
    if batch * num_tiles < 2 and tn > lane:
        tn = max(lane, (tn // 2) // lane * lane)
        num_tiles = -(-hw // tn)
    return tn, num_tiles


def vector_quantizer_forward(z_nchw, embedding, beta, legacy=True, max_row_tile=2048):
    """Pallas implementation of VectorQuantizer.forward (remap=None,
    sane_index_shape=False, forward values only).

    Returns (z_q [B,C,H,W], loss scalar, (None, None, min_encoding_indices)).
    """
    B, C, H, W = z_nchw.shape
    n_e, e_dim = embedding.shape
    assert C == e_dim, "channel dim must equal e_dim"

    HW = H * W
    TN, num_tiles = _choose_row_tile(HW, B, n_e, max_tile=max_row_tile)
    HW_pad = num_tiles * TN

    # (B, C, H, W) -> (B, C, H*W) is a free contiguous reshape: no HBM
    # transpose on either the input or the output slab.  Inside the kernel the
    # lane axis carries spatial rows, the sublane axis the tiny channel axis.
    z3 = z_nchw.reshape(B, C, HW)
    if HW_pad != HW:
        z3 = jnp.pad(z3, ((0, 0), (0, 0), (0, HW_pad - HW)))

    e = embedding.astype(jnp.float32)
    e_sq = jnp.sum(e * e, axis=1, keepdims=True)                  # (n_e, 1)
    e_aug = jnp.concatenate([-2.0 * e, e_sq], axis=1)             # (n_e, D+1)
    e_t = e.T                                                     # (D, n_e)

    grid_spec = pltpu.PrefetchScalarGridSpec(
        num_scalar_prefetch=0,
        grid=(B, num_tiles),
        in_specs=[
            pl.BlockSpec((None, e_dim, TN), lambda b, i: (b, 0, i)),  # z block
            pl.BlockSpec((n_e, e_dim + 1), lambda b, i: (0, 0)),      # e_aug (static)
            pl.BlockSpec((e_dim, n_e), lambda b, i: (0, 0)),          # e^T (static)
        ],
        out_specs=[
            pl.BlockSpec((None, e_dim, TN), lambda b, i: (b, 0, i)),  # z_q (lane-dense)
            pl.BlockSpec((None, 1, TN), lambda b, i: (b, 0, i)),      # indices
            pl.BlockSpec((None, 1, TN), lambda b, i: (b, 0, i)),      # per-row loss
        ],
        scratch_shapes=[pltpu.VMEM((e_dim + 1, TN), jnp.float32)],
    )

    # Explicit VMEM budget: double-buffered I/O blocks + (n_e, TN) temporaries
    # + codebook, with 2x headroom, clamped to [16 MiB, 48 MiB] so it is safe
    # on v5e/v6e (128 MiB) and leaves headroom on v7x (64 MiB).
    io_bytes = 2 * 4 * TN * (2 * e_dim + 2)
    temp_bytes = 4 * TN * (3 * n_e + (e_dim + 1))
    cb_bytes = 2 * 4 * n_e * (2 * e_dim + 1)
    vmem_limit = int(min(48 << 20, max(16 << 20, 2 * (io_bytes + temp_bytes + cb_bytes))))

    zq3, idx3, rloss3 = pl.pallas_call(
        _vq_kernel,
        grid_spec=grid_spec,
        out_shape=(
            jax.ShapeDtypeStruct((B, e_dim, HW_pad), z_nchw.dtype),
            jax.ShapeDtypeStruct((B, 1, HW_pad), jnp.int32),
            jax.ShapeDtypeStruct((B, 1, HW_pad), jnp.float32),
        ),
        compiler_params=pltpu.CompilerParams(
            # No cross-tile state -> both grid axes parallel (v7x: 2 TCs).
            dimension_semantics=("parallel", "parallel"),
            vmem_limit_bytes=vmem_limit,
        ),
    )(z3, e_aug, e_t)

    # mean((z_q - z)^2) over the real (un-padded) rows only.
    mean_sq = jnp.sum(rloss3[:, 0, :HW]) / jnp.float32(B * HW * e_dim)
    # TODO(synk): the two loss terms are numerically identical in the forward
    # pass; the detach() split only matters for gradients (needs custom_vjp).
    if legacy:
        loss = mean_sq + beta * mean_sq
    else:
        loss = beta * mean_sq + mean_sq

    z_q = zq3[:, :, :HW].reshape(B, C, H, W)          # free reshape back to NCHW
    min_encoding_indices = idx3[:, 0, :HW].reshape(-1)
    perplexity = None
    min_encodings = None
    return z_q, loss, (perplexity, min_encodings, min_encoding_indices)


def _reference_forward(z_nchw, embedding, beta, legacy=True):
    """Pure-JAX reference mirroring the PyTorch forward."""
    B, C, H, W = z_nchw.shape
    z = jnp.transpose(z_nchw, (0, 2, 3, 1))
    zf = z.reshape(-1, C)
    d = (jnp.sum(zf ** 2, axis=1, keepdims=True)
         + jnp.sum(embedding ** 2, axis=1)
         - 2.0 * zf @ embedding.T)
    idx = jnp.argmin(d, axis=1)
    z_q = embedding[idx].reshape(z.shape)
    mean_sq = jnp.mean((z_q - z) ** 2)
    loss = mean_sq + beta * mean_sq if legacy else beta * mean_sq + mean_sq
    z_q = z + (z_q - z)
    return jnp.transpose(z_q, (0, 3, 1, 2)), loss, idx


if __name__ == "__main__":
    # Module hyperparameters (deterministic, in-script).
    n_e = 128      # codebook size
    e_dim = 4      # embedding / channel dim
    beta = 0.25
    legacy = True

    B, C, H, W = 2, e_dim, 16, 16

    key = jax.random.PRNGKey(0)
    k_z, k_e = jax.random.split(key)
    z = jax.random.normal(k_z, (B, C, H, W), dtype=jnp.float32)
    # nn.Embedding.weight.data.uniform_(-1/n_e, 1/n_e)
    embedding = jax.random.uniform(
        k_e, (n_e, e_dim), dtype=jnp.float32, minval=-1.0 / n_e, maxval=1.0 / n_e)

    fwd = jax.jit(functools.partial(vector_quantizer_forward, beta=beta, legacy=legacy))
    z_q, loss, (_, _, indices) = fwd(z, embedding)
    jax.block_until_ready((z_q, loss, indices))

    # Correctness check against a pure-JAX reference.
    z_q_exp, loss_exp, idx_exp = _reference_forward(z, embedding, beta, legacy)
    assert z_q.shape == (B, C, H, W)
    assert indices.shape == (B * H * W,)
    assert jnp.allclose(z_q, z_q_exp, atol=1e-5, rtol=1e-5)
    assert jnp.allclose(loss, loss_exp, atol=1e-5, rtol=1e-5)
    assert jnp.all(indices.astype(jnp.int32) == idx_exp.astype(jnp.int32))

    print("KERNEL_OK")
</pallas_src>

<mosaic_0001>
module attributes {stable_mosaic.version = 11 : i64} {
  func.func @_vq_kernel(%arg0: i32, %arg1: i32, %arg2: memref<1x4x256xf32, #tpu.memory_space<vmem>>, %arg3: memref<128x5xf32, #tpu.memory_space<vmem>>, %arg4: memref<4x128xf32, #tpu.memory_space<vmem>>, %arg5: memref<1x4x256xf32, #tpu.memory_space<vmem>>, %arg6: memref<1x1x256xi32, #tpu.memory_space<vmem>>, %arg7: memref<1x1x256xf32, #tpu.memory_space<vmem>>, %arg8: memref<5x256xf32, #tpu.memory_space<vmem>>) attributes {dimension_semantics = [#tpu.dimension_semantics<parallel>, #tpu.dimension_semantics<parallel>], iteration_bounds = array<i64: 2, 1>, scalar_prefetch = 0 : i64, scratch_operands = 1 : i64, tpu.core_type = #tpu.core_type<tc>, window_params = [{transform_indices = @transform_0, window_bounds = array<i64: 1, 4, 256>}, {pipeline_mode = #tpu.pipeline_mode<synchronous>, transform_indices = @transform_1, window_bounds = array<i64: 128, 5>}, {pipeline_mode = #tpu.pipeline_mode<synchronous>, transform_indices = @transform_2, window_bounds = array<i64: 4, 128>}, {transform_indices = @transform_3, window_bounds = array<i64: 1, 4, 256>}, {transform_indices = @transform_4, window_bounds = array<i64: 1, 1, 256>}, {transform_indices = @transform_5, window_bounds = array<i64: 1, 1, 256>}]} {
    %c0 = arith.constant 0 : index
    %c0_0 = arith.constant 0 : index
    %c0_1 = arith.constant 0 : index
    %0 = vector.load %arg2[%c0, %c0_0, %c0_1] : memref<1x4x256xf32, #tpu.memory_space<vmem>>, vector<1x4x256xf32>
    %1 = vector.shape_cast %0 : vector<1x4x256xf32> to vector<4x256xf32>
    %c0_2 = arith.constant 0 : index
    %c0_3 = arith.constant 0 : index
    %2 = vector.load %arg8[%c0_2, %c0_3] : memref<5x256xf32, #tpu.memory_space<vmem>>, vector<4x256xf32>
    tpu.vector_store %arg8[%c0_2, %c0_3], %1 {strides = array<i32>} : memref<5x256xf32, #tpu.memory_space<vmem>>, vector<4x256xf32>,
    %cst = arith.constant 1.000000e+00 : f32
    %3 = vector.broadcast %cst : f32 to vector<1x256xf32>
    %c4 = arith.constant 4 : index
    %c0_4 = arith.constant 0 : index
    %4 = vector.load %arg8[%c4, %c0_4] : memref<5x256xf32, #tpu.memory_space<vmem>>, vector<1x256xf32>
    tpu.vector_store %arg8[%c4, %c0_4], %3 {strides = array<i32>} : memref<5x256xf32, #tpu.memory_space<vmem>>, vector<1x256xf32>,
    %c0_5 = arith.constant 0 : index
    %c0_6 = arith.constant 0 : index
    %5 = vector.load %arg3[%c0_5, %c0_6] : memref<128x5xf32, #tpu.memory_space<vmem>>, vector<128x5xf32>
    %c0_7 = arith.constant 0 : index
    %c0_8 = arith.constant 0 : index
    %6 = vector.load %arg8[%c0_7, %c0_8] : memref<5x256xf32, #tpu.memory_space<vmem>>, vector<5x256xf32>
    %cst_9 = arith.constant dense<0.000000e+00> : vector<128x256xf32>
    %7 = tpu.matmul %5, %6, %cst_9 {dimension_numbers = #tpu.dot_dimension_numbers<[1], [0], [0], [1], [0, 0, 1, 1], [], []>} : vector<128x5xf32>, vector<5x256xf32>, vector<128x256xf32> -> vector<128x256xf32>
    %cst_10 = arith.constant dense<0x7F800000> : vector<256xf32>
    %8 = vector.multi_reduction <minimumf>, %7, %cst_10 [0] : vector<128x256xf32> to vector<256xf32>
    %9 = vector.shape_cast %8 : vector<256xf32> to vector<1x256xf32>
    %10 = tpu.iota {dimensions = array<i32: 0>} : vector<128x256xi32>
    %11 = vector.broadcast %9 : vector<1x256xf32> to vector<128x256xf32>
    %12 = arith.cmpf oeq, %7, %11 : vector<128x256xf32>
    %c128_i32 = arith.constant 128 : i32
    %13 = vector.broadcast %c128_i32 : i32 to vector<128x256xi32>
    %14 = arith.select %12, %10, %13 : vector<128x256xi1>, vector<128x256xi32>
    %cst_11 = arith.constant dense<2147483647> : vector<256xi32>
    %15 = vector.multi_reduction <minsi>, %14, %cst_11 [0] : vector<128x256xi32> to vector<256xi32>
    %16 = vector.shape_cast %15 : vector<256xi32> to vector<1x256xi32>
    %17 = vector.broadcast %16 : vector<1x256xi32> to vector<128x256xi32>
    %18 = arith.cmpi eq, %10, %17 : vector<128x256xi32>
    %19 = arith.extui %18 : vector<128x256xi1> to vector<128x256xi32>
    %20 = arith.sitofp %19 : vector<128x256xi32> to vector<128x256xf32>
    %c0_12 = arith.constant 0 : index
    %c0_13 = arith.constant 0 : index
    %21 = vector.load %arg4[%c0_12, %c0_13] : memref<4x128xf32, #tpu.memory_space<vmem>>, vector<4x128xf32>
    %cst_14 = arith.constant dense<0.000000e+00> : vector<4x256xf32>
    %22 = tpu.matmul %21, %20, %cst_14 {dimension_numbers = #tpu.dot_dimension_numbers<[1], [0], [0], [1], [0, 0, 1, 1], [], []>} : vector<4x128xf32>, vector<128x256xf32>, vector<4x256xf32> -> vector<4x256xf32>
    %23 = arith.subf %22, %1 : vector<4x256xf32>
    %24 = arith.addf %1, %23 : vector<4x256xf32>
    %c0_15 = arith.constant 0 : index
    %c0_16 = arith.constant 0 : index
    %c0_17 = arith.constant 0 : index
    %25 = vector.load %arg5[%c0_15, %c0_16, %c0_17] : memref<1x4x256xf32, #tpu.memory_space<vmem>>, vector<1x4x256xf32>
    %26 = vector.shape_cast %25 : vector<1x4x256xf32> to vector<4x256xf32>
    %27 = vector.shape_cast %24 : vector<4x256xf32> to vector<1x4x256xf32>
    tpu.vector_store %arg5[%c0_15, %c0_16, %c0_17], %27 {strides = array<i32>} : memref<1x4x256xf32, #tpu.memory_space<vmem>>, vector<1x4x256xf32>,
    %c0_18 = arith.constant 0 : index
    %c0_19 = arith.constant 0 : index
    %c0_20 = arith.constant 0 : index
    %28 = vector.load %arg6[%c0_18, %c0_19, %c0_20] : memref<1x1x256xi32, #tpu.memory_space<vmem>>, vector<1x1x256xi32>
    %29 = vector.shape_cast %28 : vector<1x1x256xi32> to vector<1x256xi32>
    %30 = vector.shape_cast %16 : vector<1x256xi32> to vector<1x1x256xi32>
    tpu.vector_store %arg6[%c0_18, %c0_19, %c0_20], %30 {strides = array<i32>} : memref<1x1x256xi32, #tpu.memory_space<vmem>>, vector<1x1x256xi32>,
    %31 = arith.mulf %23, %23 : vector<4x256xf32>
    %cst_21 = arith.constant dense<0.000000e+00> : vector<256xf32>
    %32 = vector.multi_reduction <add>, %31, %cst_21 [0] : vector<4x256xf32> to vector<256xf32>
    %33 = vector.shape_cast %32 : vector<256xf32> to vector<1x256xf32>
    %c0_22 = arith.constant 0 : index
    %c0_23 = arith.constant 0 : index
    %c0_24 = arith.constant 0 : index
    %34 = vector.load %arg7[%c0_22, %c0_23, %c0_24] : memref<1x1x256xf32, #tpu.memory_space<vmem>>, vector<1x1x256xf32>
    %35 = vector.shape_cast %34 : vector<1x1x256xf32> to vector<1x256xf32>
    %36 = vector.shape_cast %33 : vector<1x256xf32> to vector<1x1x256xf32>
    tpu.vector_store %arg7[%c0_22, %c0_23, %c0_24], %36 {strides = array<i32>} : memref<1x1x256xf32, #tpu.memory_space<vmem>>, vector<1x1x256xf32>,
    return
  }
  func.func @transform_0(%arg0: i32, %arg1: i32) -> (i32, i32, i32) {
    %c0_i32 = arith.constant 0 : i32
    %c0_i32_0 = arith.constant 0 : i32
    return %arg0, %c0_i32, %arg1 : i32, i32, i32
  }
  func.func @transform_1(%arg0: i32, %arg1: i32) -> (i32, i32) {
    %c0_i32 = arith.constant 0 : i32
    %c0_i32_0 = arith.constant 0 : i32
    %c0_i32_1 = arith.constant 0 : i32
    return %c0_i32, %c0_i32_0 : i32, i32
  }
  func.func @transform_2(%arg0: i32, %arg1: i32) -> (i32, i32) {
    %c0_i32 = arith.constant 0 : i32
    %c0_i32_0 = arith.constant 0 : i32
    %c0_i32_1 = arith.constant 0 : i32
    return %c0_i32, %c0_i32_0 : i32, i32
  }
  func.func @transform_3(%arg0: i32, %arg1: i32) -> (i32, i32, i32) {
    %c0_i32 = arith.constant 0 : i32
    %c0_i32_0 = arith.constant 0 : i32
    return %arg0, %c0_i32, %arg1 : i32, i32, i32
  }
  func.func @transform_4(%arg0: i32, %arg1: i32) -> (i32, i32, i32) {
    %c0_i32 = arith.constant 0 : i32
    %c0_i32_0 = arith.constant 0 : i32
    return %arg0, %c0_i32, %arg1 : i32, i32, i32
  }
  func.func @transform_5(%arg0: i32, %arg1: i32) -> (i32, i32, i32) {
    %c0_i32 = arith.constant 0 : i32
    %c0_i32_0 = arith.constant 0 : i32
    return %arg0, %c0_i32, %arg1 : i32, i32, i32
  }
}

</mosaic_0001>

<bundles_post_ra>
// kernel: vector_quantizer_forward.1
= control target key start
LH: loop header
LB: loop body
LE: loop exit
PB: predicated region body
PF: predicated region fallthrough
CT: control target
= control target key end

     0   :  { %11 = vsyncpa [#allocation4], 0  ;;  %s1984_s0 = inlined_call_operand.vmem [shape: f32[2,4,256], index: 0, kind: input, shape index: {}]   ;;  %s1985_s1 = inlined_call_operand.vmem [shape: f32[128,5], index: 1, kind: input, shape index: {}]   ;;  %s1986_s2 = inlined_call_operand.vmem [shape: f32[4,128], index: 2, kind: input, shape index: {}]   ;;  %s1987_s3 = inlined_call_operand.vmem [shape: f32[2,4,256], index: 3, kind: output, shape index: {0}]   ;;  %s1988_s4 = inlined_call_operand.hbm [shape: s32[2,1,256], index: 4, kind: output, shape index: {1}]   ;;  %s1989_s5 = inlined_call_operand.vmem [shape: f32[2,1,256], index: 5, kind: output, shape index: {2}]  }
   0x1   :  { %13 = vsyncpa [#allocation4 + $0x1], 0  ;;  %s1369_s18 = smov 0   ;;  %s1371_s19 = smov 0  }
   0x2   :  { %s1373_s20 = smov 0   ;;  %s1375_s21 = smov 0  }
   0x3   :  { %s1377_s22 = smov 0   ;;  %s1379_s23 = smov 0  }
   0x4 LB: > { %s1085_s24 = sadd.s32 4294967295, %s1336_s23   ;;  %s1086_s25 = sadd.s32 4294967294, %s1336_s23   ;;  %s1336_s23 = sphi %s1379_s23, %s19_s23   ;;  %s1332_s22 = sphi %s1377_s22, %s2000_s22   ;;  %s1328_s21 = sphi %s1375_s21, %s1999_s21   ;;  %s1324_s20 = sphi %s1373_s20, %s1998_s20   ;;  %s1320_s19 = sphi %s1371_s19, %s1997_s19   ;;  %s1316_s18 = sphi %s1369_s18, %s1996_s18  }
   0x5   : > { %s31_s26 = sadd.s32 1, %s1332_s22  ;;  %s138_s27 = sadd.s32 1, %s1324_s20 }
   0x6   : > { %p33_p0 = scmp.ge.s32.totalorder %s31_s26, 2  ;;  %p148_p1 = scmp.ne.s32.totalorder %s1324_s20, %s1320_s19 }
   0x7   : > { %p149_p2 = scmp.eq.s32.totalorder %s1085_s24, 1  ;;  %p154_p3 = scmp.ne.s32.totalorder %s1320_s19, %s1316_s18 }
   0x8   : > { %s2002_s26 = smov (%p33_p0, %s31_s26), 0  ;;  %p155_p5 = scmp.eq.s32.totalorder %s1086_s25, 1 }
   0x9   : > { %p1409_p4 = por %p149_p2, %p148_p1  ;;  %s133_s29 = ssub.s32 %s1332_s22, %s2002_s26 }
   0xa   : > { %p1089_p6 = scmp.ge.s32.totalorder %s1336_s23, 1  ;;  %p136_p7 = scmp.eq.s32.totalorder %s133_s29, 0 }
   0xb   : > { %p1416_p8 = por %p155_p5, %p154_p3  ;;  %p220_p9 = scmp.lt.s32.totalorder %s1336_s23, 3 }
   0xc   : > { %s1422_s6 = scalar_select %p136_p7, %s1324_s20, %s138_s27  }
   0xd   : > { %p221_p10 = pnand %p1089_p6, %p220_p9 }
   0xe   : > { %p270_p11 = scmp.lt.s32.totalorder (!%p221_p10), %s1328_s21, 1  ;;  %s256_s24 = sand.u32 (!%p221_p10), 1, %s1320_s19  }
   0xf   : > { %224 = sbr.rel (%p221_p10) target bundleno = 488 (0x1e8), region = 32  ;;  %s1858_s25 = sshll.u32 (!%p221_p10), %s256_s24, 1 }
  0x10   : > { %s258_s27 = scalar_lea.vmem (!%p221_p10), [#allocation3], %s1858_s25  ;;  %s1195_s10 = sshll.u32 (!%p221_p10), %s1328_s21, 1 }
  0x11   : > { %s932_s13 = scalar_lea.hbm (!%p221_p10), %s1988_s4, %s1195_s10  ;;  %s934_s14 = sshll.u32 (!%p221_p10), %s258_s27, 4  ;;  %s935_s14 = int_to_ptr.vmem [resolvable:$true] %s934_s14 }
  0x12   : > { %s936_s15 = sshll.u32 (!%p221_p10), %s932_s13, 4  ;;  %s908_s16 = scalar_lea.sflag (!%p221_p10), [#allocation4], %s256_s24  ;;  %s937_s15 = int_to_ptr.hbm [resolvable:$true] %s936_s15 }
  0x13   : > { %s1272_s17 = sshra.s32 (!%p221_p10), %s937_s15, 4  ;;  %s1273_s17 = int_to_ptr.hbm [resolvable:$true] %s1272_s17 }
  0x14   : > { %v308_v0 = vlaneseq  ;;  %s1426_s7 = scalar_select %p270_p11, %s1328_s21, 1  ;;  %v1338_v2 = vmov 1.0   ;;  %vm382_vm1 = vcmask 1044480   ;;  %v315_v6 = vld [vmem:[%s1985_s1] sm:$0xff]  ;;  %vm333_vm2 = vcmask 39936   ;;  %v324_v9 = vld [vmem:[%s1985_s1 + $0x48] sm:$0xff] }
  0x15   : > { %v325_v10 = vld [vmem:[%s1985_s1 + $0x50] sm:$0xff]  ;;  %v316_v11 = vld [vmem:[%s1985_s1 + $0x8] sm:$0xff]  ;;  %v326_v12 = vld [vmem:[%s1985_s1 + $0x58] sm:$0xff]  ;;  %s1274_s29 = scalar_lea.hbm %s1273_s17, 2  ;;  %p1279_p1 = scmp.lt.s32.totalorder %s1273_s17, %s1988_s4 }
  0x16   : > { %vm1429_vm0 = vcmp.lt.s32.totalorder %v308_v0, 256  ;;  %s1990_s8 = sshll.u32 %s1426_s7, 3  ;;  %v317_v13 = vld [vmem:[%s1985_s1 + $0x10] sm:$0xff]  ;;  %v327_v14 = vld [vmem:[%s1985_s1 + $0x60] sm:$0xff]  ;;  %v318_v15 = vld [vmem:[%s1985_s1 + $0x18] sm:$0xff]  ;;  %p1275_p12 = scmp.ne.s32.totalorder %s1273_s17, %s1274_s29 }
  0x17   : > { %313 = vst.msk [vmem:[#allocation2 + $0x4] ss:$8 sm:$0x3] %vm1429_vm0, %v1338_v2  ;;  %s277_s11 = scalar_lea.vmem %s1984_s0, %s1990_s8  ;;  %v328_v16 = vld [vmem:[%s1985_s1 + $0x68] sm:$0xff]  ;;  %v319_v17 = vld [vmem:[%s1985_s1 + $0x20] sm:$0xff]  ;;  %v329_v18 = vld [vmem:[%s1985_s1 + $0x70] sm:$0xff] }
  0x18   : > { %v1442_v3 = vld [vmem:[%s277_s11] sm:$0xff]  ;;  %v320_v19 = vld [vmem:[%s1985_s1 + $0x28] sm:$0xff]  ;;  %v330_v20 = vld [vmem:[%s1985_s1 + $0x78] sm:$0xff]  ;;  %p1276_p13 = pnand %p1275_p12, %p1409_p4  ;;  %s1278_s8 = scalar_lea.hbm %s1988_s4, 4 }
  0x19   : > { %301 = vst [vmem:[#allocation1] ss:$2 sm:$0xff] %v1442_v3  ;;  %v321_v21 = vld [vmem:[%s1985_s1 + $0x30] sm:$0xff]  ;;  %v322_v22 = vld [vmem:[%s1985_s1 + $0x38] sm:$0xff]  ;;  %v323_v23 = vld [vmem:[%s1985_s1 + $0x40] sm:$0xff]  ;;  %p1280_p2 = scmp.lt.s32.totalorder %s1278_s8, %s1274_s29 }
  0x1a   : > { %p1277_p0 = pneg %p1276_p13 }
  0x1b   : > { %p1281_p3 = por %p1280_p2, %p1279_p1 }
  0x1d   : > { %p1282_p5 = pnand %p1281_p3, %p1277_p0 }
  0x20   : > { %v302_v4 = vld.sshfl [vmem:[#allocation1] sm:$0xff pattern:$0x75316420]  ;;  %v303_v5 = vld.sshfl [vmem:[#allocation1 + $0x8] sm:$0xff pattern:$0x75316420] }
  0x21   : > { %306 = vst [vmem:[#allocation2] sm:$0xf] %v302_v4 }
  0x22   : > { %307 = vst [vmem:[#allocation2 + $0x8] sm:$0xf] %v303_v5 }
  0x23   : > { %857 = vst [vmem:[#allocation1] ss:$2 sm:$0xff] %v1442_v3 }
  0x28   : > { %v331_v7 = vld [vmem:[#allocation2] sm:$0x1f] }
  0x29   : > { %1096 = vmatpush.msk.msra.mxu0 %vm382_vm1, %v331_v7  ;;  %v332_v8 = vld [vmem:[#allocation2 + $0x8] sm:$0x1f]  ;;  %1200 = vmatpush.msk.msra.mxu2 %vm382_vm1, %v331_v7 }
  0x2a   : > { %1113 = vmatpush.msk.msra.mxu1 %vm382_vm1, %v332_v8  ;;  %1097 = vmatmul.msk.f32.vlgmr.msra.gmra.mxu0 %vm333_vm2, %v315_v6 }
  0x2b   : > { %1114 = vmatmul.msk.f32.vlgmr.msra.gmra.mxu1 %vm333_vm2, %v315_v6  ;;  %1201 = vmatpush.msk.msra.mxu3 %vm382_vm1, %v332_v8 }
  0x2c   : > { %1123 = vmatmul.msk.f32.vlgmr.msra.gmra.mxu3 %vm333_vm2, %v324_v9  ;;  %1107 = vmatmul.msk.f32.vlgmr.msra.gmra.mxu2 %vm333_vm2, %v325_v10 }
  0x32   : > { %1098 = vmatmul.msk.f32.gmra.mxu0 %vm333_vm2, %v316_v11 }
  0x33   : > { %1115 = vmatmul.msk.f32.gmra.mxu1 %vm333_vm2, %v316_v11 }
  0x34   : > { %1124 = vmatmul.msk.f32.gmra.mxu3 %vm333_vm2, %v325_v10  ;;  %1108 = vmatmul.msk.f32.gmra.mxu2 %vm333_vm2, %v326_v12 }
  0x3a   : > { %1099 = vmatmul.msk.f32.gmra.mxu0 %vm333_vm2, %v317_v13 }
  0x3b   : > { %1116 = vmatmul.msk.f32.gmra.mxu1 %vm333_vm2, %v317_v13 }
  0x3c   : > { %1125 = vmatmul.msk.f32.gmra.mxu3 %vm333_vm2, %v326_v12  ;;  %1109 = vmatmul.msk.f32.gmra.mxu2 %vm333_vm2, %v327_v14 }
  0x42   : > { %1100 = vmatmul.msk.f32.gmra.mxu0 %vm333_vm2, %v318_v15 }
  0x43   : > { %1117 = vmatmul.msk.f32.gmra.mxu1 %vm333_vm2, %v318_v15 }
  0x44   : > { %1126 = vmatmul.msk.f32.gmra.mxu3 %vm333_vm2, %v327_v14  ;;  %1110 = vmatmul.msk.f32.gmra.mxu2 %vm333_vm2, %v328_v16 }
  0x4a   : > { %1101 = vmatmul.msk.f32.gmra.mxu0 %vm333_vm2, %v319_v17 }
  0x4b   : > { %1118 = vmatmul.msk.f32.gmra.mxu1 %vm333_vm2, %v319_v17 }
  0x4c   : > { %1127 = vmatmul.msk.f32.gmra.mxu3 %vm333_vm2, %v328_v16  ;;  %1111 = vmatmul.msk.f32.gmra.mxu2 %vm333_vm2, %v329_v18 }
  0x52   : > { %1102 = vmatmul.msk.f32.gmra.mxu0 %vm333_vm2, %v320_v19 }
  0x53   : > { %1119 = vmatmul.msk.f32.gmra.mxu1 %vm333_vm2, %v320_v19 }
  0x54   : > { %1128 = vmatmul.msk.f32.gmra.mxu3 %vm333_vm2, %v329_v18  ;;  %1112 = vmatmul.msk.f32.gmra.mxu2 %vm333_vm2, %v330_v20 }
  0x5a   : > { %1103 = vmatmul.msk.f32.gmra.mxu0 %vm333_vm2, %v321_v21 }
  0x5b   : > { %1120 = vmatmul.msk.f32.gmra.mxu1 %vm333_vm2, %v321_v21 }
  0x5c   : > { %1129 = vmatmul.msk.f32.gmra.mxu3 %vm333_vm2, %v330_v20 }
  0x62   : > { %1104 = vmatmul.msk.f32.gmra.mxu0 %vm333_vm2, %v322_v22 }
  0x63   : > { %1121 = vmatmul.msk.f32.gmra.mxu1 %vm333_vm2, %v322_v22 }
  0x6a   : > { %1105 = vmatmul.msk.f32.gmra.mxu0 %vm333_vm2, %v323_v23 }
  0x6b   : > { %1122 = vmatmul.msk.f32.gmra.mxu1 %vm333_vm2, %v323_v23 }
  0x72   : > { %1106 = vmatmul.msk.f32.gmra.mxu0 %vm333_vm2, %v324_v9 }
  0xa7   : > { %v1526_v24 = vpop.f32.mrf.mxu0 }
  0xa8   : > { %v1528_v25 = vpop.f32.mrf.mxu1 }
  0xaf   : > { %v1530_v26 = vpop.f32.mrf.mxu0  ;;  %v1534_v28 = vpop.f32.mrf.mxu3 }
  0xb0   : > { %v1532_v27 = vpop.f32.mrf.mxu1  ;;  %v1546_v34 = vpop.f32.mrf.mxu2 }
  0xb7   : > { %v1536_v29 = vpop.f32.mrf.mxu0  ;;  %v1540_v31 = vpop.f32.mrf.mxu3 }
  0xb8   : > { %v1538_v30 = vpop.f32.mrf.mxu1  ;;  %v1554_v38 = vpop.f32.mrf.mxu2  ;;  %v519_v55 = vmin.f32 %v1526_v24, %v1536_v29 }
  0xb9   : > { %v540_v53 = vmin.f32 %v1528_v25, %v1538_v30 }
  0xbf   : > { %v1542_v32 = vpop.f32.mrf.mxu0  ;;  %v1548_v35 = vpop.f32.mrf.mxu3 }
  0xc0   : > { %v1544_v33 = vpop.f32.mrf.mxu1  ;;  %v1562_v42 = vpop.f32.mrf.mxu2  ;;  %v520_v5 = vmin.f32 %v1530_v26, %v1542_v32 }
  0xc1   : > { %v541_v46 = vmin.f32 %v1532_v27, %v1544_v33 }
  0xc7   : > { %v1550_v36 = vpop.f32.mrf.mxu0  ;;  %v1556_v39 = vpop.f32.mrf.mxu3 }
  0xc8   : > { %v1552_v37 = vpop.f32.mrf.mxu1  ;;  %v1575_v49 = vpop.f32.mrf.mxu2  ;;  %v521_v57 = vmin.f32 %v519_v55, %v1550_v36 }
  0xc9   : > { %v542_v56 = vmin.f32 %v540_v53, %v1552_v37 }
  0xcf   : > { %v1558_v40 = vpop.f32.mrf.mxu0  ;;  %v1568_v45 = vpop.f32.mrf.mxu3 }
  0xd0   : > { %v1560_v41 = vpop.f32.mrf.mxu1  ;;  %v1597_v4 = vpop.f32.mrf.mxu2  ;;  %v522_v9 = vmin.f32 %v520_v5, %v1558_v40 }
  0xd1   : > { %v543_v47 = vmin.f32 %v541_v46, %v1560_v41 }
  0xd7   : > { %v1564_v43 = vpop.f32.mrf.mxu0  ;;  %v1580_v52 = vpop.f32.mrf.mxu3 }
  0xd8   : > { %v1566_v44 = vpop.f32.mrf.mxu1  ;;  %v523_v61 = vmin.f32 %v521_v57, %v1564_v43  ;;  %v1617_v22 = vpop.f32.mrf.mxu2 }
  0xd9   : > { %v544_v58 = vmin.f32 %v542_v56, %v1566_v44  ;;  %v1623_v56 = vshrl.u32 %v308_v0, 7 }
  0xdb   : > { %v1631_v5 = vadd.s32 16, %v1623_v56  ;;  %v1640_v0 = vadd.s32 40, %v1623_v56 }
  0xdf   : > { %v1573_v48 = vpop.f32.mrf.mxu0  ;;  %v1605_v10 = vpop.f32.mrf.mxu3 }
  0xe0   : > { %v1577_v50 = vpop.f32.mrf.mxu1  ;;  %v524_v12 = vmin.f32 %v522_v9, %v1573_v48  ;;  %v1654_v9 = vadd.s32 56, %v1623_v56 }
  0xe1   : > { %v545_v51 = vmin.f32 %v543_v47, %v1577_v50 }
  0xe3   : > { %v547_v54 = vmin.f32 %v545_v51, %v1534_v28 }
  0xe5   : > { %v549_v60 = vmin.f32 %v547_v54, %v1548_v35 }
  0xe7   : > { %v1590_v59 = vpop.f32.mrf.mxu0  ;;  %v551_v8 = vmin.f32 %v549_v60, %v1568_v45 }
  0xe8   : > { %v1594_v62 = vpop.f32.mrf.mxu1  ;;  %v525_v6 = vmin.f32 %v523_v61, %v1590_v59  ;;  %v1628_v61 = vadd.s32 8, %v1623_v56 }
  0xe9   : > { %v546_v63 = vmin.f32 %v544_v58, %v1594_v62  ;;  %v553_v15 = vmin.f32 %v551_v8, %v1605_v10  ;;  %v1651_v8 = vadd.s32 48, %v1623_v56 }
  0xea   : > { %v527_v13 = vmin.f32 %v525_v6, %v1546_v34  ;;  %v1634_v6 = vadd.s32 24, %v1623_v56 }
  0xeb   : > { %v548_v7 = vmin.f32 %v546_v63, %v1540_v31 }
  0xec   : > { %v529_v19 = vmin.f32 %v527_v13, %v1562_v42 }
  0xed   : > { %v550_v11 = vmin.f32 %v548_v7, %v1556_v39  ;;  %v1637_v7 = vadd.s32 32, %v1623_v56 }
  0xee   : > { %v531_v47 = vmin.f32 %v529_v19, %v1597_v4  ;;  %v1679_v19 = vadd.s32 112, %v1623_v56 }
  0xef   : > { %v552_v14 = vmin.f32 %v550_v11, %v1580_v52  ;;  %v1612_v16 = vpop.f32.mrf.mxu0  ;;  %v1657_v11 = vadd.s32 64, %v1623_v56 }
  0xf0   : > { %v526_v17 = vmin.f32 %v524_v12, %v1612_v16 }
  0xf1   : > { %v554_v18 = vmin.f32 %v552_v14, %v553_v15 }
  0xf2   : > { %v528_v20 = vmin.f32 %v526_v17, %v1554_v38 }
  0xf3   : > { %v555_v21 = vrot.slane %v554_v18, 4 }
  0xf4   : > { %v530_v23 = vmin.f32 %v528_v20, %v1575_v49  ;;  %v1686_v20 = vadd.s32 120, %v1623_v56 }
  0xf5   : > { %v556_v46 = vmin.f32 %v554_v18, %v555_v21  ;;  %v1676_v18 = vadd.s32 104, %v1623_v56 }
  0xf6   : > { %v532_v51 = vmin.f32 %v530_v23, %v1617_v22 }
  0xf7   : > { %v557_v53 = vrot.slane %v556_v46, 2 }
  0xf8   : > { %v533_v54 = vmin.f32 %v531_v47, %v532_v51 }
  0xf9   : > { %v558_v55 = vmin.f32 %v556_v46, %v557_v53 }
  0xfa   : > { %v534_v58 = vrot.slane %v533_v54, 4 }
  0xfb   : > { %v559_v57 = vrot.slane %v558_v55, 1 }
  0xfc   : > { %v535_v63 = vmin.f32 %v533_v54, %v534_v58 }
  0xfd   : > { %v1625_v60 = vmin.f32 %v558_v55, %v559_v57 }
  0xfe   : > { %v536_v12 = vrot.slane %v535_v63, 2 }
  0xff   : > { %vm579_vm3 = vcmp.eq.f32.partialorder %v1528_v25, %v1625_v60  ;;  %vm581_vm4 = vcmp.eq.f32.partialorder %v1532_v27, %v1625_v60  ;;  %vm583_vm5 = vcmp.eq.f32.partialorder %v1538_v30, %v1625_v60  ;;  %vm585_vm6 = vcmp.eq.f32.partialorder %v1544_v33, %v1625_v60 }
 0x100   : > { %v1660_v25 = vadd.s32 72, %v1623_v56  ;;  %v1663_v27 = vadd.s32 80, %v1623_v56  ;;  %v1666_v30 = vadd.s32 88, %v1623_v56  ;;  %v1669_v33 = vadd.s32 96, %v1623_v56 }
 0x101   : > { %v611_v13 = vsel %vm579_vm3, %v1623_v56, 128  ;;  %v613_v14 = vsel %vm581_vm4, %v1628_v61, 128  ;;  %v615_v15 = vsel %vm583_vm5, %v1631_v5, 128  ;;  %v617_v17 = vsel %vm585_vm6, %v1634_v6, 128 }
 0x102   : > { %vm587_vm7 = vcmp.eq.f32.partialorder %v1552_v37, %v1625_v60  ;;  %vm589_vm8 = vcmp.eq.f32.partialorder %v1560_v41, %v1625_v60  ;;  %vm591_vm9 = vcmp.eq.f32.partialorder %v1566_v44, %v1625_v60  ;;  %vm593_vm10 = vcmp.eq.f32.partialorder %v1577_v50, %v1625_v60 }
 0x103   : > { %vm595_vm11 = vcmp.eq.f32.partialorder %v1594_v62, %v1625_v60  ;;  %vm597_vm12 = vcmp.eq.f32.partialorder %v1534_v28, %v1625_v60  ;;  %vm681_vm13 = vcmp.lt.s32.totalorder %v611_v13, %v615_v15  ;;  %vm683_vm14 = vcmp.lt.s32.totalorder %v613_v14, %v617_v17 }
 0x104   : > { %v537_v37 = vmin.f32 %v535_v63, %v536_v12  ;;  %v619_v41 = vsel %vm587_vm7, %v1637_v7, 128  ;;  %v621_v21 = vsel %vm589_vm8, %v1640_v0, 128  ;;  %v682_v23 = vsel %vm681_vm13, %v611_v13, %v615_v15 }
 0x105   : > { %v684_v46 = vsel %vm683_vm14, %v613_v14, %v617_v17  ;;  %vm599_vm15 = vcmp.eq.f32.partialorder %v1540_v31, %v1625_v60  ;;  %vm601_vm1 = vcmp.eq.f32.partialorder %v1548_v35, %v1625_v60  ;;  %vm685_vm2 = vcmp.lt.s32.totalorder %v682_v23, %v619_v41 }
 0x106   : > { %vm687_vm3 = vcmp.lt.s32.totalorder %v684_v46, %v621_v21  ;;  %v623_v44 = vsel %vm591_vm9, %v1651_v8, 128  ;;  %v625_v50 = vsel %vm593_vm10, %v1654_v9, 128  ;;  %v686_v47 = vsel %vm685_vm2, %v682_v23, %v619_v41 }
 0x107   : > { %v688_v51 = vsel %vm687_vm3, %v684_v46, %v621_v21  ;;  %vm603_vm4 = vcmp.eq.f32.partialorder %v1556_v39, %v1625_v60  ;;  %vm689_vm5 = vcmp.lt.s32.totalorder %v686_v47, %v623_v44  ;;  %v538_v53 = vrot.slane %v537_v37, 1 }
 0x108   : > { %vm691_vm6 = vcmp.lt.s32.totalorder %v688_v51, %v625_v50  ;;  %v627_v54 = vsel %vm595_vm11, %v1657_v11, 128  ;;  %v629_v55 = vsel %vm597_vm12, %v1660_v25, 128  ;;  %v690_v57 = vsel %vm689_vm5, %v686_v47, %v623_v44 }
 0x109   : > { %v692_v58 = vsel %vm691_vm6, %v688_v51, %v625_v50  ;;  %vm605_vm7 = vcmp.eq.f32.partialorder %v1568_v45, %v1625_v60  ;;  %vm607_vm8 = vcmp.eq.f32.partialorder %v1580_v52, %v1625_v60  ;;  %vm693_vm9 = vcmp.lt.s32.totalorder %v690_v57, %v627_v54 }
 0x10a   : > { %vm695_vm10 = vcmp.lt.s32.totalorder %v692_v58, %v629_v55  ;;  %v631_v62 = vsel %vm599_vm15, %v1663_v27, 128  ;;  %v633_v28 = vsel %vm601_vm1, %v1666_v30, 128  ;;  %v694_v63 = vsel %vm693_vm9, %v690_v57, %v627_v54 }
 0x10b   : > { %v696_v12 = vsel %vm695_vm10, %v692_v58, %v629_v55  ;;  %vm609_vm11 = vcmp.eq.f32.partialorder %v1605_v10, %v1625_v60  ;;  %vm697_vm12 = vcmp.lt.s32.totalorder %v694_v63, %v631_v62  ;;  %v1728_v45 = vmin.f32 %v537_v37, %v538_v53 }
 0x10c   : > { %vm699_vm13 = vcmp.lt.s32.totalorder %v696_v12, %v633_v28  ;;  %v635_v31 = vsel %vm603_vm4, %v1669_v33, 128  ;;  %v637_v13 = vsel %vm605_vm7, %v1676_v18, 128  ;;  %v698_v14 = vsel %vm697_vm12, %v694_v63, %v631_v62 }
 0x10d   : > { %v700_v15 = vsel %vm699_vm13, %v696_v12, %v633_v28  ;;  %vm701_vm14 = vcmp.lt.s32.totalorder %v698_v14, %v635_v31  ;;  %v639_v35 = vsel %vm607_vm8, %v1679_v19, 128  ;;  %v641_v10 = vsel %vm609_vm11, %v1686_v20, 128 }
 0x10e   : > { %vm703_vm15 = vcmp.lt.s32.totalorder %v700_v15, %v637_v13  ;;  %v702_v17 = vsel %vm701_vm14, %v698_v14, %v635_v31  ;;  %vm578_vm3 = vcmp.eq.f32.partialorder %v1526_v24, %v1728_v45  ;;  %vm580_vm4 = vcmp.eq.f32.partialorder %v1530_v26, %v1728_v45 }
 0x10f   : > { %v704_v37 = vsel %vm703_vm15, %v700_v15, %v637_v13  ;;  %vm705_vm1 = vcmp.lt.s32.totalorder %v702_v17, %v639_v35  ;;  %vm582_vm5 = vcmp.eq.f32.partialorder %v1536_v29, %v1728_v45  ;;  %vm584_vm6 = vcmp.eq.f32.partialorder %v1542_v32, %v1728_v45 }
 0x110   : > { %vm707_vm2 = vcmp.lt.s32.totalorder %v704_v37, %v641_v10  ;;  %v706_v39 = vsel %vm705_vm1, %v702_v17, %v639_v35  ;;  %vm586_vm8 = vcmp.eq.f32.partialorder %v1550_v36, %v1728_v45  ;;  %vm588_vm9 = vcmp.eq.f32.partialorder %v1558_v40, %v1728_v45 }
 0x111   : > { %v708_v41 = vsel %vm707_vm2, %v704_v37, %v641_v10  ;;  %vm590_vm10 = vcmp.eq.f32.partialorder %v1564_v43, %v1728_v45  ;;  %v610_v24 = vsel %vm578_vm3, %v1623_v56, 128  ;;  %v612_v60 = vsel %vm580_vm4, %v1628_v61, 128 }
 0x112   : > { %vm709_vm7 = vcmp.lt.s32.totalorder %v706_v39, %v708_v41  ;;  %v614_v29 = vsel %vm582_vm5, %v1631_v5, 128  ;;  %v616_v32 = vsel %vm584_vm6, %v1634_v6, 128  ;;  %vm592_vm11 = vcmp.eq.f32.partialorder %v1573_v48, %v1728_v45 }
 0x113   : > { %v710_v52 = vsel %vm709_vm7, %v706_v39, %v708_v41  ;;  %vm594_vm12 = vcmp.eq.f32.partialorder %v1590_v59, %v1728_v45  ;;  %vm596_vm13 = vcmp.eq.f32.partialorder %v1612_v16, %v1728_v45  ;;  %vm598_vm14 = vcmp.eq.f32.partialorder %v1546_v34, %v1728_v45 }
 0x114   : > { %v711_v26 = vrot.slane %v710_v52, 4  ;;  %vm600_vm1 = vcmp.eq.f32.partialorder %v1554_v38, %v1728_v45  ;;  %vm602_vm2 = vcmp.eq.f32.partialorder %v1562_v42, %v1728_v45  ;;  %vm604_vm3 = vcmp.eq.f32.partialorder %v1575_v49, %v1728_v45 }
 0x115   : > { %v618_v23 = vsel %vm586_vm8, %v1637_v7, 128  ;;  %vm642_vm4 = vcmp.lt.s32.totalorder %v610_v24, %v614_v29  ;;  %vm644_vm5 = vcmp.lt.s32.totalorder %v612_v60, %v616_v32  ;;  %v620_v44 = vsel %vm588_vm9, %v1640_v0, 128 }
 0x116   : > { %vm712_vm15 = vcmp.lt.s32.totalorder %v710_v52, %v711_v26  ;;  %v643_v50 = vsel %vm642_vm4, %v610_v24, %v614_v29  ;;  %v645_v47 = vsel %vm644_vm5, %v612_v60, %v616_v32  ;;  %vm606_vm6 = vcmp.eq.f32.partialorder %v1597_v4, %v1728_v45 }
 0x117   : > { %v713_v21 = vsel %vm712_vm15, %v710_v52, %v711_v26  ;;  %v622_v51 = vsel %vm590_vm10, %v1651_v8, 128  ;;  %vm646_vm7 = vcmp.lt.s32.totalorder %v643_v50, %v618_v23  ;;  %vm648_vm8 = vcmp.lt.s32.totalorder %v645_v47, %v620_v44 }
 0x118   : > { %v714_v46 = vrot.slane %v713_v21, 2  ;;  %v624_v36 = vsel %vm592_vm11, %v1654_v9, 128  ;;  %v647_v40 = vsel %vm646_vm7, %v643_v50, %v618_v23  ;;  %v649_v53 = vsel %vm648_vm8, %v645_v47, %v620_v44 }
 0x119   : > { %v626_v55 = vsel %vm594_vm12, %v1657_v11, 128  ;;  %vm650_vm9 = vcmp.lt.s32.totalorder %v647_v40, %v622_v51  ;;  %vm652_vm4 = vcmp.lt.s32.totalorder %v649_v53, %v624_v36  ;;  %v628_v57 = vsel %vm596_vm13, %v1660_v25, 128 }
 0x11a   : > { %vm715_vm15 = vcmp.lt.s32.totalorder %v713_v21, %v714_v46  ;;  %v651_v58 = vsel %vm650_vm9, %v647_v40, %v622_v51  ;;  %v653_v62 = vsel %vm652_vm4, %v649_v53, %v624_v36  ;;  %vm608_vm10 = vcmp.eq.f32.partialorder %v1617_v22, %v1728_v45 }
 0x11b   : > { %v716_v54 = vsel %vm715_vm15, %v713_v21, %v714_v46  ;;  %v630_v48 = vsel %vm598_vm14, %v1663_v27, 128  ;;  %vm654_vm11 = vcmp.lt.s32.totalorder %v651_v58, %v626_v55  ;;  %vm656_vm12 = vcmp.lt.s32.totalorder %v653_v62, %v628_v57 }
 0x11c   : > { %v717_v43 = vrot.slane %v716_v54, 1  ;;  %v632_v59 = vsel %vm600_vm1, %v1666_v30, 128  ;;  %v655_v16 = vsel %vm654_vm11, %v651_v58, %v626_v55  ;;  %v657_v28 = vsel %vm656_vm12, %v653_v62, %v628_v57 }
 0x11d   : > { %v634_v12 = vsel %vm602_vm2, %v1669_v33, 128  ;;  %vm658_vm13 = vcmp.lt.s32.totalorder %v655_v16, %v630_v48  ;;  %vm660_vm7 = vcmp.lt.s32.totalorder %v657_v28, %v632_v59  ;;  %v636_v34 = vsel %vm604_vm3, %v1676_v18, 128 }
 0x11e   : > { %vm718_vm5 = vcmp.lt.s32.totalorder %v716_v54, %v717_v43  ;;  %v659_v31 = vsel %vm658_vm13, %v655_v16, %v630_v48  ;;  %v661_v13 = vsel %vm660_vm7, %v657_v28, %v632_v59  ;;  %v638_v38 = vsel %vm606_vm6, %v1679_v19, 128 }
 0x11f   : > { %v1808_v63 = vsel %vm718_vm5, %v716_v54, %v717_v43  ;;  %vm662_vm1 = vcmp.lt.s32.totalorder %v659_v31, %v634_v12  ;;  %vm664_vm8 = vcmp.lt.s32.totalorder %v661_v13, %v636_v34  ;;  %v640_v42 = vsel %vm608_vm10, %v1686_v20, 128 }
 0x120   : > { %vm751_vm14 = vcmp.eq.s32.totalorder %v1686_v20, %v1808_v63  ;;  %v663_v49 = vsel %vm662_vm1, %v659_v31, %v634_v12  ;;  %v665_v14 = vsel %vm664_vm8, %v661_v13, %v636_v34  ;;  %vm749_vm2 = vcmp.eq.s32.totalorder %v1679_v19, %v1808_v63 }
 0x121   : > { %1178 = vmatpush.msk.msrb.mxu3 %vm751_vm14, %v1338_v2  ;;  %vm666_vm3 = vcmp.lt.s32.totalorder %v663_v49, %v638_v38  ;;  %vm668_vm15 = vcmp.lt.s32.totalorder %v665_v14, %v640_v42  ;;  %vm747_vm6 = vcmp.eq.s32.totalorder %v1676_v18, %v1808_v63  ;;  %vm745_vm4 = vcmp.eq.s32.totalorder %v1669_v33, %v1808_v63 }
 0x122   : > { %v667_v4 = vsel %vm666_vm3, %v663_v49, %v638_v38  ;;  %v669_v15 = vsel %vm668_vm15, %v665_v14, %v640_v42  ;;  %vm743_vm10 = vcmp.eq.s32.totalorder %v1666_v30, %v1808_v63  ;;  %vm741_vm12 = vcmp.eq.s32.totalorder %v1663_v27, %v1808_v63 }
 0x123   : > { %1179 = vmatpush.msk.msrb.mxu3 %vm749_vm2, %v1338_v2  ;;  %vm670_vm9 = vcmp.lt.s32.totalorder %v667_v4, %v669_v15  ;;  %vm739_vm5 = vcmp.eq.s32.totalorder %v1660_v25, %v1808_v63  ;;  %vm737_vm7 = vcmp.eq.s32.totalorder %v1657_v11, %v1808_v63  ;;  %vm735_vm14 = vcmp.eq.s32.totalorder %v1654_v9, %v1808_v63 }
 0x124   : > { %v671_v35 = vsel %vm670_vm9, %v667_v4, %v669_v15  ;;  %vm733_vm8 = vcmp.eq.s32.totalorder %v1651_v8, %v1808_v63  ;;  %vm731_vm3 = vcmp.eq.s32.totalorder %v1640_v0, %v1808_v63  ;;  %vm873_vm15 = vcmask 1040384  }
 0x125   : > { %1180 = vmatpush.msk.msrb.mxu3 %vm747_vm6, %v1338_v2  ;;  %v672_v22 = vrot.slane %v671_v35, 4 }
 0x127   : > { %1181 = vmatpush.msk.msrb.mxu3 %vm745_vm4, %v1338_v2  ;;  %vm673_vm11 = vcmp.lt.s32.totalorder %v671_v35, %v672_v22 }
 0x128   : > { %v674_v45 = vsel %vm673_vm11, %v671_v35, %v672_v22 }
 0x129   : > { %1182 = vmatpush.msk.msrb.mxu3 %vm743_vm10, %v1338_v2  ;;  %v675_v10 = vrot.slane %v674_v45, 2  ;;  %vm729_vm10 = vcmp.eq.s32.totalorder %v1637_v7, %v1808_v63 }
 0x12b   : > { %1183 = vmatpush.msk.msrb.mxu3 %vm741_vm12, %v1338_v2  ;;  %vm676_vm13 = vcmp.lt.s32.totalorder %v674_v45, %v675_v10 }
 0x12c   : > { %v677_v17 = vsel %vm676_vm13, %v674_v45, %v675_v10 }
 0x12d   : > { %1184 = vmatpush.msk.msrb.mxu3 %vm739_vm5, %v1338_v2  ;;  %v678_v37 = vrot.slane %v677_v17, 1 }
 0x12f   : > { %1185 = vmatpush.msk.msrb.mxu3 %vm737_vm7, %v1338_v2  ;;  %vm679_vm1 = vcmp.lt.s32.totalorder %v677_v17, %v678_v37  ;;  %vm727_vm7 = vcmp.eq.s32.totalorder %v1634_v6, %v1808_v63 }
 0x130   : > { %v680_v39 = vsel %vm679_vm1, %v677_v17, %v678_v37  ;;  %vm725_vm1 = vcmp.eq.s32.totalorder %v1631_v5, %v1808_v63 }
 0x131   : > { %1186 = vmatpush.msk.msrb.mxu3 %vm735_vm14, %v1338_v2  ;;  %vm750_vm2 = vcmp.eq.s32.totalorder %v1686_v20, %v680_v39  ;;  %vm748_vm6 = vcmp.eq.s32.totalorder %v1679_v19, %v680_v39  ;;  %vm730_vm9 = vcmp.eq.s32.totalorder %v1640_v0, %v680_v39  ;;  %vm728_vm4 = vcmp.eq.s32.totalorder %v1637_v7, %v680_v39 }
 0x132   : > { %1162 = vmatpush.msk.msrb.mxu2 %vm750_vm2, %v1338_v2  ;;  %v872_v20 = vrot.slane %v1808_v63, 7  ;;  %vm726_vm11 = vcmp.eq.s32.totalorder %v1634_v6, %v680_v39  ;;  %vm724_vm12 = vcmp.eq.s32.totalorder %v1631_v5, %v680_v39  ;;  %vm722_vm5 = vcmp.eq.s32.totalorder %v1628_v61, %v680_v39 }
 0x133   : > { %1187 = vmatpush.msk.msrb.mxu3 %vm733_vm8, %v1338_v2  ;;  %vm746_vm13 = vcmp.eq.s32.totalorder %v1676_v18, %v680_v39  ;;  %vm744_vm14 = vcmp.eq.s32.totalorder %v1669_v33, %v680_v39  ;;  %vm742_vm8 = vcmp.eq.s32.totalorder %v1666_v30, %v680_v39  ;;  %vm723_vm2 = vcmp.eq.s32.totalorder %v1628_v61, %v1808_v63  ;;  %v816_v33 = vld [vmem:[%s1986_s2] sm:$0xf] }
 0x134   : > { %1163 = vmatpush.msk.msrb.mxu2 %vm748_vm6, %v1338_v2  ;;  %v874_v19 = vsel %vm873_vm15, %v680_v39, %v872_v20  ;;  %vm721_vm6 = vcmp.eq.s32.totalorder %v1623_v56, %v1808_v63 }
 0x135   : > { %1188 = vmatpush.msk.msrb.mxu3 %vm731_vm3, %v1338_v2  ;;  %875 = vst.msk [vmem:[%s258_s27] sm:$0x3] %vm1429_vm0, %v874_v19  ;;  %vm740_vm3 = vcmp.eq.s32.totalorder %v1663_v27, %v680_v39 }
 0x136   : > { %1164 = vmatpush.msk.msrb.mxu2 %vm746_vm13, %v1338_v2  ;;  %vm736_vm13 = vcmp.eq.s32.totalorder %v1657_v11, %v680_v39 }
 0x137   : > { %1189 = vmatpush.msk.msrb.mxu3 %vm729_vm10, %v1338_v2  ;;  %vm738_vm10 = vcmp.eq.s32.totalorder %v1660_v25, %v680_v39 }
 0x138   : > { %1165 = vmatpush.msk.msrb.mxu2 %vm744_vm14, %v1338_v2  ;;  %vm732_vm14 = vcmp.eq.s32.totalorder %v1651_v8, %v680_v39 }
 0x139   : > { %1190 = vmatpush.msk.msrb.mxu3 %vm727_vm7, %v1338_v2  ;;  %vm734_vm7 = vcmp.eq.s32.totalorder %v1654_v9, %v680_v39 }
 0x13a   : > { %1166 = vmatpush.msk.msrb.mxu2 %vm742_vm8, %v1338_v2 }
 0x13b   : > { %1191 = vmatpush.msk.msrb.mxu3 %vm725_vm1, %v1338_v2  ;;  %vm720_vm1 = vcmp.eq.s32.totalorder %v1623_v56, %v680_v39 }
 0x13c   : > { %1167 = vmatpush.msk.msrb.mxu2 %vm740_vm3, %v1338_v2 }
 0x13d   : > { %1192 = vmatpush.msk.msrb.mxu3 %vm723_vm2, %v1338_v2 }
 0x13e   : > { %1168 = vmatpush.msk.msrb.mxu2 %vm738_vm10, %v1338_v2 }
 0x13f   : > { %1193 = vmatpush.msk.msrb.mxu3 %vm721_vm6, %v1338_v2 }
 0x140   : > { %853 = vmatmul.f32.vlgmr.msrb.gmra.mxu3 %v816_v33  ;;  %1169 = vmatpush.msk.msrb.mxu2 %vm736_vm13, %v1338_v2 }
 0x142   : > { %1170 = vmatpush.msk.msrb.mxu2 %vm734_vm7, %v1338_v2 }
 0x144   : > { %1171 = vmatpush.msk.msrb.mxu2 %vm732_vm14, %v1338_v2 }
 0x146   : > { %1172 = vmatpush.msk.msrb.mxu2 %vm730_vm9, %v1338_v2 }
 0x148   : > { %1173 = vmatpush.msk.msrb.mxu2 %vm728_vm4, %v1338_v2 }
 0x14a   : > { %1174 = vmatpush.msk.msrb.mxu2 %vm726_vm11, %v1338_v2 }
 0x14c   : > { %1175 = vmatpush.msk.msrb.mxu2 %vm724_vm12, %v1338_v2 }
 0x14e   : > { %1176 = vmatpush.msk.msrb.mxu2 %vm722_vm5, %v1338_v2 }
 0x150   : > { %1177 = vmatpush.msk.msrb.mxu2 %vm720_vm1, %v1338_v2 }
 0x151   : > { %833 = vmatmul.f32.vlgmr.msrb.gmra.mxu2 %v816_v33 }
 0x152   : > { %1285 = shalt.err (!%p1282_p5)
}
 0x153   : > { %1202 = dma.vmem_to_hbm [thread:$0]  (%p1409_p4), %s935_s14, 32, %s937_s15, %s908_s16   ;;  %v859_v2 = vld.sshfl [vmem:[#allocation1 + $0x8] sm:$0xff pattern:$0x75316420]  ;;  %vm867_vm9 = vcmask 1043456  }
 0x154   : > { %v858_v8 = vld.sshfl [vmem:[#allocation1] sm:$0xff pattern:$0x75316420]  ;;  %s1995_s8 = sshll.u32 %s1426_s7, 3  ;;  %s1095_s27 = sshll.u32 %s1426_s7, 1 }
 0x155   : > { %s287_s28 = scalar_lea.vmem %s1987_s3, %s1995_s8  ;;  %s297_s14 = scalar_lea.vmem %s1989_s5, %s1095_s27 }
 0x1c3   : > { %v854_v56 = vpop.f32.mrf.mxu3 }
 0x1c4   : > { %v863_v61 = vsub.f32 %v854_v56, %v859_v2 }
 0x1c6   : > { %v877_v5 = vmul.f32 %v863_v61, %v863_v61  ;;  %v866_v9 = vrot.slane %v863_v61, 4 }
 0x1c8   : > { %v885_v6 = vsel %vm867_vm9, %v877_v5, 0.0 }
 0x1c9   : > { %v886_v7 = vrot.slane %v885_v6, 4 }
 0x1cb   : > { %v887_v0 = vadd.f32 %v886_v7, %v885_v6 }
 0x1cd   : > { %v888_v11 = vrot.slane %v887_v0, 2 }
 0x1cf   : > { %v889_v41 = vadd.f32 %v888_v11, %v887_v0 }
 0x1d1   : > { %v890_v60 = vrot.slane %v889_v41, 1 }
 0x1d3   : > { %v891_v21 = vadd.f32 %v890_v60, %v889_v41 }
 0x1d4   : > { %v834_v25 = vpop.f32.mrf.mxu2 }
 0x1d5   : > { %v862_v27 = vsub.f32 %v834_v25, %v858_v8  ;;  %v894_v44 = vrot.slane %v891_v21, 7 }
 0x1d7   : > { %v868_v30 = vsel %vm867_vm9, %v862_v27, %v866_v9  ;;  %v876_v18 = vmul.f32 %v862_v27, %v862_v27 }
 0x1d8   : > { %v870_v52 = vadd.f32 %v868_v30, %v1442_v3 }
 0x1d9   : > { %v878_v24 = vsel %vm867_vm9, %v876_v18, 0.0 }
 0x1da   : > { %871 = vst [vmem:[%s287_s28] sm:$0xff] %v870_v52  ;;  %v879_v26 = vrot.slane %v878_v24, 4 }
 0x1dc   : > { %v880_v29 = vadd.f32 %v879_v26, %v878_v24 }
 0x1de   : > { %v881_v32 = vrot.slane %v880_v29, 2 }
 0x1e0   : > { %v882_v23 = vadd.f32 %v881_v32, %v880_v29 }
 0x1e2   : > { %v883_v46 = vrot.slane %v882_v23, 1 }
 0x1e4   : > { %v884_v50 = vadd.f32 %v883_v46, %v882_v23 }
 0x1e6   : > { %v895_v47 = vsel %vm873_vm15, %v884_v50, %v894_v44 }
 0x1e7   : > { %897 = vst.msk [vmem:[%s297_s14] sm:$0x3] %vm1429_vm0, %v895_v47 }
 0x1e8 PF: > { %p1208_p4 = scmp.ge.s32.totalorder %s1336_s23, 2  ;;  %s964_s15 = sand.u32 1, %s1316_s18  }
 0x1e9   : > { %s965_s7 = scalar_lea.sflag [#allocation4], %s964_s15 }
 0x1ea   : > { %p1205_p6 = pnand %p1208_p4, %p1416_p8 }
 0x1ec   : > { %p1206_p7 = pneg %p1205_p6 }
 0x1ee   : > { %1311 = dma.done.wait (%p1206_p7), %s965_s7, 32  }
 0x1ef   : > { %1313 = vsyncadd (%p1206_p7), %s965_s7, 4294967264  ;;  %s19_s23 = sadd.s32 1, %s1336_s23   ;;  %s1996_s18 = smov %s1320_s19 }
 0x1f0   : > { %p16_p9 = scmp.ge.s32.totalorder %s19_s23, 4   ;;  %s1997_s19 = smov %s1324_s20 }
 0x1f1   : > { %s1998_s20 = smov %s1422_s6  ;;  %s1999_s21 = smov %s1332_s22 }
 0x1f2   : > { %s2000_s22 = smov %s2002_s26  ;;  %18 = sbr.rel (!%p16_p9) target bundleno = 4 (0x4), region = 92 }
 0x1f7   :  { %982 = vsyncpa [#allocation4], 1 }
 0x1f8   :  { %984 = vsyncpa [#allocation4 + $0x1], 1 }

</bundles_post_ra>
